<compile_context>
chip_gen: v6e
topology: v6e:2x2x1
jax: 0.10.0
libtpu: 0.0.40
codegen_flags: <defaults>
</compile_context>

<pallas_src>
import math
import functools
from collections import OrderedDict

import jax
import jax.numpy as jnp
from jax.experimental import pallas as pl
from jax.experimental.pallas import tpu as pltpu

NUM_LABELS_N_MASKS = 5
LN_EPS = 1e-12
VMEM_LIMIT = 48 * 1024 * 1024   # safe scoped-VMEM hint on v5e/v6e/v7x
HEAD_PAD = 128                  # lane-dense padding for the tiny heads


def _erf(x):
    # Abramowitz & Stegun 7.1.26 polynomial erf, |abs err| <= 1.5e-7 (f32-exact).
    # Uses only exp / mul / add / select so it lowers cleanly in Mosaic.
    a1, a2, a3, a4, a5 = 0.254829592, -0.284496736, 1.421413741, -1.453152027, 1.061405429
    p = 0.3275911
    ax = jnp.abs(x)
    t = 1.0 / (1.0 + p * ax)
    poly = ((((a5 * t + a4) * t + a3) * t + a2) * t + a1) * t
    y = 1.0 - poly * jnp.exp(-ax * ax)
    return jnp.where(x >= 0, y, -y)


def _gelu(x):
    # matches the reference torch `gelu` (exact erf form) to f32 precision
    return x * 0.5 * (1.0 + _erf(x * (1.0 / math.sqrt(2.0))))


def _ln_core(x, g, b, eps):
    mean = jnp.mean(x, axis=-1, keepdims=True)
    var = jnp.mean(jnp.square(x - mean), axis=-1, keepdims=True)
    return (x - mean) * jax.lax.rsqrt(var + eps) * g + b


def _tile(dim, pref):
    """Pick the largest tile <= pref that divides dim; fall back to full dim."""
    if dim <= pref:
        return dim
    for t in (pref, 512, 256, 128):
        if t <= pref and dim % t == 0:
            return t
    return dim


def _pad_to(arr, shape):
    pads = [(0, t - s) for s, t in zip(arr.shape, shape)]
    return jnp.pad(arr, pads)


# ----------------------------- tiled linear -----------------------------

def _linear_kernel(x_ref, w_ref, b_ref, o_ref, acc_ref, *, activation, transpose_w):
    k = pl.program_id(2)

    @pl.when(k == 0)
    def _():
        acc_ref[...] = jnp.zeros_like(acc_ref)

    x = x_ref[...].astype(jnp.bfloat16)
    w = w_ref[...].astype(jnp.bfloat16)
    if transpose_w:
        acc_ref[...] += jax.lax.dot_general(
            x, w, (((1,), (1,)), ((), ())), preferred_element_type=jnp.float32)
    else:
        acc_ref[...] += jnp.dot(x, w, preferred_element_type=jnp.float32)

    @pl.when(k == pl.num_programs(2) - 1)
    def _():
        y = acc_ref[...] + b_ref[...]
        if activation == "gelu":
            y = _gelu(y)
        o_ref[...] = y.astype(o_ref.dtype)


def linear(x, w, b, activation=None, transpose_w=False, tm=256, tn=256, tk=512):
    """y = x @ w + b (optional gelu). x:[M,K]; w:[K,N] (or [N,K] if transpose_w)."""
    M, K = x.shape
    N = w.shape[0] if transpose_w else w.shape[1]
    tm = _tile(M, tm)
    tn = _tile(N, tn)
    tk = _tile(K, tk)
    grid = (M // tm, N // tn, K // tk)
    if transpose_w:
        w_spec = pl.BlockSpec((tn, tk), lambda i, j, k: (j, k))
    else:
        w_spec = pl.BlockSpec((tk, tn), lambda i, j, k: (k, j))
    return pl.pallas_call(
        functools.partial(_linear_kernel, activation=activation,
                          transpose_w=transpose_w),
        out_shape=jax.ShapeDtypeStruct((M, N), jnp.float32),
        grid=grid,
        in_specs=[
            pl.BlockSpec((tm, tk), lambda i, j, k: (i, k)),
            w_spec,
            pl.BlockSpec((1, tn), lambda i, j, k: (0, j)),
        ],
        out_specs=pl.BlockSpec((tm, tn), lambda i, j, k: (i, j)),
        scratch_shapes=[pltpu.VMEM((tm, tn), jnp.float32)],
        compiler_params=pltpu.CompilerParams(
            dimension_semantics=("parallel", "parallel", "arbitrary"),
            vmem_limit_bytes=VMEM_LIMIT),
    )(x, w, b)


# ------------------- fused linear (+residual) + layernorm -------------------

def _linear_res_ln_kernel(x_ref, w_ref, b_ref, r_ref, g_ref, beta_ref,
                          o_ref, acc_ref, *, eps):
    k = pl.program_id(1)

    @pl.when(k == 0)
    def _():
        acc_ref[...] = jnp.zeros_like(acc_ref)

    acc_ref[...] += jnp.dot(x_ref[...].astype(jnp.bfloat16),
                            w_ref[...].astype(jnp.bfloat16),
                            preferred_element_type=jnp.float32)

    @pl.when(k == pl.num_programs(1) - 1)
    def _():
        y = acc_ref[...] + b_ref[...] + r_ref[...].astype(jnp.float32)
        o_ref[...] = _ln_core(y, g_ref[...], beta_ref[...], eps).astype(o_ref.dtype)


def linear_residual_ln(x, w, b, residual, g, beta, eps=LN_EPS, tm=256, tk=512):
    """LayerNorm(x @ w + b + residual). w:[K,N]; LN over full N."""
    M, K = x.shape
    N = w.shape[1]
    tm = _tile(M, tm)
    tk = _tile(K, tk)
    grid = (M // tm, K // tk)
    return pl.pallas_call(
        functools.partial(_linear_res_ln_kernel, eps=eps),
        out_shape=jax.ShapeDtypeStruct((M, N), jnp.float32),
        grid=grid,
        in_specs=[
            pl.BlockSpec((tm, tk), lambda i, k: (i, k)),
            pl.BlockSpec((tk, N), lambda i, k: (k, 0)),
            pl.BlockSpec((1, N), lambda i, k: (0, 0)),
            pl.BlockSpec((tm, N), lambda i, k: (i, 0)),
            pl.BlockSpec((1, N), lambda i, k: (0, 0)),
            pl.BlockSpec((1, N), lambda i, k: (0, 0)),
        ],
        out_specs=pl.BlockSpec((tm, N), lambda i, k: (i, 0)),
        scratch_shapes=[pltpu.VMEM((tm, N), jnp.float32)],
        compiler_params=pltpu.CompilerParams(
            dimension_semantics=("parallel", "arbitrary"),
            vmem_limit_bytes=VMEM_LIMIT),
    )(x, w, b, residual, g, beta)


def _linear_gelu_ln_kernel(x_ref, w_ref, b_ref, g_ref, beta_ref,
                           o_ref, acc_ref, *, eps):
    k = pl.program_id(1)

    @pl.when(k == 0)
    def _():
        acc_ref[...] = jnp.zeros_like(acc_ref)

    acc_ref[...] += jnp.dot(x_ref[...].astype(jnp.bfloat16),
                            w_ref[...].astype(jnp.bfloat16),
                            preferred_element_type=jnp.float32)

    @pl.when(k == pl.num_programs(1) - 1)
    def _():
        y = _gelu(acc_ref[...] + b_ref[...])
        o_ref[...] = _ln_core(y, g_ref[...], beta_ref[...], eps).astype(o_ref.dtype)


def linear_gelu_ln(x, w, b, g, beta, eps=LN_EPS, tm=256, tk=512):
    """LayerNorm(gelu(x @ w + b)) -- ViSoBertLMHead dense/gelu/layer_norm fused."""
    M, K = x.shape
    N = w.shape[1]
    tm = _tile(M, tm)
    tk = _tile(K, tk)
    grid = (M // tm, K // tk)
    return pl.pallas_call(
        functools.partial(_linear_gelu_ln_kernel, eps=eps),
        out_shape=jax.ShapeDtypeStruct((M, N), jnp.float32),
        grid=grid,
        in_specs=[
            pl.BlockSpec((tm, tk), lambda i, k: (i, k)),
            pl.BlockSpec((tk, N), lambda i, k: (k, 0)),
            pl.BlockSpec((1, N), lambda i, k: (0, 0)),
            pl.BlockSpec((1, N), lambda i, k: (0, 0)),
            pl.BlockSpec((1, N), lambda i, k: (0, 0)),
        ],
        out_specs=pl.BlockSpec((tm, N), lambda i, k: (i, 0)),
        scratch_shapes=[pltpu.VMEM((tm, N), jnp.float32)],
        compiler_params=pltpu.CompilerParams(
            dimension_semantics=("parallel", "arbitrary"),
            vmem_limit_bytes=VMEM_LIMIT),
    )(x, w, b, g, beta)


# ----------------------------- embeddings LN -----------------------------

def _embed_ln_kernel(we_ref, pe_ref, te_ref, g_ref, b_ref, o_ref, *, eps):
    x = (we_ref[...].astype(jnp.float32)
         + pe_ref[...].astype(jnp.float32)
         + te_ref[...].astype(jnp.float32))
    o_ref[...] = _ln_core(x, g_ref[...], b_ref[...], eps)


def embed_layer_norm(we, pe, te, g, b, eps=LN_EPS, tm=512):
    M, H = we.shape
    tm = _tile(M, tm)
    grid = (M // tm,)
    return pl.pallas_call(
        functools.partial(_embed_ln_kernel, eps=eps),
        out_shape=jax.ShapeDtypeStruct((M, H), jnp.float32),
        grid=grid,
        in_specs=[
            pl.BlockSpec((tm, H), lambda i: (i, 0)),
            pl.BlockSpec((tm, H), lambda i: (i, 0)),
            pl.BlockSpec((tm, H), lambda i: (i, 0)),
            pl.BlockSpec((1, H), lambda i: (0, 0)),
            pl.BlockSpec((1, H), lambda i: (0, 0)),
        ],
        out_specs=pl.BlockSpec((tm, H), lambda i: (i, 0)),
        compiler_params=pltpu.CompilerParams(
            dimension_semantics=("parallel",),
            vmem_limit_bytes=VMEM_LIMIT),
    )(we, pe, te, g, b)


# ----------------------------- attention -----------------------------

def _attn_kernel(q_ref, k_ref, v_ref, m_ref, o_ref, *, n_heads, head_dim, scale):
    q = q_ref[0].astype(jnp.float32) * scale      # [S, H], scale folded into q
    k = k_ref[0].astype(jnp.float32)              # [S, H]
    v = v_ref[0].astype(jnp.float32)              # [S, H]
    bias = m_ref[0]                               # [1, S] additive mask
    ctx = []
    for h in range(n_heads):
        lo = h * head_dim
        qh = q[:, lo:lo + head_dim].astype(jnp.bfloat16)
        kh = k[:, lo:lo + head_dim].astype(jnp.bfloat16)
        vh = v[:, lo:lo + head_dim].astype(jnp.bfloat16)
        s = jax.lax.dot_general(qh, kh, (((1,), (1,)), ((), ())),
                                preferred_element_type=jnp.float32) + bias
        s = s - jnp.max(s, axis=-1, keepdims=True)
        p = jnp.exp(s)
        p = p * pl.reciprocal(jnp.sum(p, axis=-1, keepdims=True), approx=True)
        ctx.append(jnp.dot(p.astype(jnp.bfloat16), vh,
                           preferred_element_type=jnp.float32))
    # lane-dense [S, H] write directly in the layout the o-projection consumes
    o_ref[0] = jnp.concatenate(ctx, axis=-1)


def attention(q, k, v, mask_bias, scale, n_heads):
    """q,k,v: [B, S, H]; mask_bias: [B, 1, S] -> context [B, S, H]"""
    B, S, H = q.shape
    head_dim = H // n_heads
    return pl.pallas_call(
        functools.partial(_attn_kernel, n_heads=n_heads,
                          head_dim=head_dim, scale=scale),
        out_shape=jax.ShapeDtypeStruct((B, S, H), jnp.float32),
        grid=(B,),
        in_specs=[
            pl.BlockSpec((1, S, H), lambda b: (b, 0, 0)),
            pl.BlockSpec((1, S, H), lambda b: (b, 0, 0)),
            pl.BlockSpec((1, S, H), lambda b: (b, 0, 0)),
            pl.BlockSpec((1, 1, S), lambda b: (b, 0, 0)),
        ],
        out_specs=pl.BlockSpec((1, S, H), lambda b: (b, 0, 0)),
        compiler_params=pltpu.CompilerParams(
            dimension_semantics=("parallel",),
            vmem_limit_bytes=VMEM_LIMIT),
    )(q, k, v, mask_bias)


# ----------------------------- tiny heads (fused) -----------------------------

def _small_heads_kernel(h_ref, mw1_ref, mb1_ref, mw2_ref, mb2_ref,
                        nw1_ref, nb1_ref, nw2_ref, nb2_ref, mo_ref, no_ref):
    h = h_ref[...].astype(jnp.bfloat16)
    m1 = _gelu(jnp.dot(h, mw1_ref[...].astype(jnp.bfloat16),
                       preferred_element_type=jnp.float32) + mb1_ref[...])
    mo_ref[...] = (jnp.dot(m1.astype(jnp.bfloat16), mw2_ref[...].astype(jnp.bfloat16),
                           preferred_element_type=jnp.float32) + mb2_ref[...])
    n1 = _gelu(jnp.dot(h, nw1_ref[...].astype(jnp.bfloat16),
                       preferred_element_type=jnp.float32) + nb1_ref[...])
    no_ref[...] = (jnp.dot(n1.astype(jnp.bfloat16), nw2_ref[...].astype(jnp.bfloat16),
                           preferred_element_type=jnp.float32) + nb2_ref[...])


def small_heads(hidden, p, tm=512):
    """Fused mask-N-prediction head + nsw head; lane-padded outputs [M, 128]."""
    M, H = hidden.shape
    tm = _tile(M, tm)
    grid = (M // tm,)
    P = HEAD_PAD
    full2 = lambda shape: pl.BlockSpec(shape, lambda i: (0, 0))
    return pl.pallas_call(
        _small_heads_kernel,
        out_shape=(jax.ShapeDtypeStruct((M, P), jnp.float32),
                   jax.ShapeDtypeStruct((M, P), jnp.float32)),
        grid=grid,
        in_specs=[
            pl.BlockSpec((tm, H), lambda i: (i, 0)),
            full2((H, P)), full2((1, P)), full2((P, P)), full2((1, P)),
            full2((H, P)), full2((1, P)), full2((P, P)), full2((1, P)),
        ],
        out_specs=(pl.BlockSpec((tm, P), lambda i: (i, 0)),
                   pl.BlockSpec((tm, P), lambda i: (i, 0))),
        compiler_params=pltpu.CompilerParams(
            dimension_semantics=("parallel",),
            vmem_limit_bytes=VMEM_LIMIT),
    )(hidden,
      p["mnp_dense_w"], p["mnp_dense_b"], p["mnp_proj_w"], p["mnp_proj_b"],
      p["nsw_dense_w"], p["nsw_dense_b"], p["nsw_proj_w"], p["nsw_proj_b"])


# ----------------------------- parameters -----------------------------

def init_params(key, cfg):
    H = cfg["hidden_size"]
    V = cfg["vocab_size"]
    I = cfg["intermediate_size"]
    keys = iter(jax.random.split(key, 256))

    def w(din, dout):
        return jax.random.normal(next(keys), (din, dout), jnp.float32) * 0.02

    def b(dout):
        return jnp.zeros((1, dout), jnp.float32)

    params = {}
    we = jax.random.normal(next(keys), (V, H), jnp.float32) * 0.02
    we = we.at[cfg["pad_token_id"]].set(0.0)   # padding_idx row zeroed
    params["word_emb"] = we
    params["pos_emb"] = jax.random.normal(
        next(keys), (cfg["max_position_embeddings"], H), jnp.float32) * 0.02
    params["type_emb"] = jax.random.normal(
        next(keys), (cfg["type_vocab_size"], H), jnp.float32) * 0.02
    params["emb_ln_g"] = jnp.ones((1, H), jnp.float32)
    params["emb_ln_b"] = jnp.zeros((1, H), jnp.float32)

    layers = []
    for _ in range(cfg["num_layers"]):
        qw, kw, vw = w(H, H), w(H, H), w(H, H)
        layers.append({
            "qkv_w": jnp.concatenate([qw, kw, vw], axis=1),   # fused [H, 3H]
            "qkv_b": jnp.zeros((1, 3 * H), jnp.float32),
            "o_w": w(H, H), "o_b": b(H),
            "attn_ln_g": jnp.ones((1, H), jnp.float32),
            "attn_ln_b": jnp.zeros((1, H), jnp.float32),
            "ffn_in_w": w(H, I), "ffn_in_b": b(I),
            "ffn_out_w": w(I, H), "ffn_out_b": b(H),
            "ffn_ln_g": jnp.ones((1, H), jnp.float32),
            "ffn_ln_b": jnp.zeros((1, H), jnp.float32),
        })
    params["layers"] = layers

    # ViSoBertLMHead: dense -> gelu -> layernorm -> decoder (tied to word_emb) + bias
    params["cls_dense_w"] = w(H, H)
    params["cls_dense_b"] = b(H)
    params["cls_ln_g"] = jnp.ones((1, H), jnp.float32)
    params["cls_ln_b"] = jnp.zeros((1, H), jnp.float32)
    params["decoder_b"] = jnp.zeros((1, V), jnp.float32)

    # Tiny heads, zero-padded to 128 lanes (padding columns/rows are exact zeros,
    # so padded outputs are correct on the first 5 / 2 columns and sliced off).
    P = HEAD_PAD
    params["mnp_dense_w"] = _pad_to(w(H, 50), (H, P))
    params["mnp_dense_b"] = jnp.zeros((1, P), jnp.float32)
    params["mnp_proj_w"] = _pad_to(w(50, NUM_LABELS_N_MASKS), (P, P))
    params["mnp_proj_b"] = jnp.zeros((1, P), jnp.float32)
    # TODO(synk): BinaryPredictor source not provided; modeled as dense(H->100)+gelu+proj(100->2).
    params["nsw_dense_w"] = _pad_to(w(H, 100), (H, P))
    params["nsw_dense_b"] = jnp.zeros((1, P), jnp.float32)
    params["nsw_proj_w"] = _pad_to(w(100, 2), (P, P))
    params["nsw_proj_b"] = jnp.zeros((1, P), jnp.float32)
    return params


# ----------------------------- forward -----------------------------

def visobert_forward(params, cfg, input_ids, attention_mask=None):
    B, S = input_ids.shape
    H = cfg["hidden_size"]
    nH = cfg["num_heads"]
    dh = H // nH
    M = B * S

    if attention_mask is None:
        attention_mask = jnp.ones_like(input_ids)

    # XLM-RoBERTa pad-aware position ids
    pad = cfg["pad_token_id"]
    not_pad = (input_ids != pad).astype(jnp.int32)
    position_ids = jnp.cumsum(not_pad, axis=1) * not_pad + pad
    token_type_ids = jnp.zeros_like(input_ids)

    # Embedding gathers stay in glue (data-dependent gather).
    we = jnp.take(params["word_emb"], input_ids.reshape(-1), axis=0)
    pe = jnp.take(params["pos_emb"], position_ids.reshape(-1), axis=0)
    te = jnp.take(params["type_emb"], token_type_ids.reshape(-1), axis=0)
    hidden = embed_layer_norm(we, pe, te, params["emb_ln_g"], params["emb_ln_b"])

    # additive attention mask bias [B, 1, S] (fp32 softmax path)
    mask_bias = (1.0 - attention_mask[:, None, :].astype(jnp.float32)) * -1e9
    scale = 1.0 / math.sqrt(dh)

    for lyr in params["layers"]:
        qkv = linear(hidden, lyr["qkv_w"], lyr["qkv_b"])            # [M, 3H]
        qkv = qkv.reshape(B, S, 3 * H)
        q, k, v = jnp.split(qkv, 3, axis=-1)                        # each [B, S, H]
        ctx = attention(q, k, v, mask_bias, scale, nH).reshape(M, H)
        hidden = linear_residual_ln(ctx, lyr["o_w"], lyr["o_b"], hidden,
                                    lyr["attn_ln_g"], lyr["attn_ln_b"])
        inter = linear(hidden, lyr["ffn_in_w"], lyr["ffn_in_b"], activation="gelu")
        hidden = linear_residual_ln(inter, lyr["ffn_out_w"], lyr["ffn_out_b"], hidden,
                                    lyr["ffn_ln_g"], lyr["ffn_ln_b"])

    sequence_output = hidden.reshape(B, S, H)

    # ---- ViSoBertLMHead (dense+gelu+LN fused; tied decoder, no wrapper transpose) ----
    x = linear_gelu_ln(hidden, params["cls_dense_w"], params["cls_dense_b"],
                       params["cls_ln_g"], params["cls_ln_b"])
    prediction_scores = linear(x, params["word_emb"], params["decoder_b"],
                               transpose_w=True).reshape(B, S, -1)

    # ---- ViSoBertMaskNPredictionHead + nsw_detector (fused, lane-padded) ----
    mnp_pad, nsw_pad = small_heads(hidden, params)
    logits_n_masks = mnp_pad[:, :NUM_LABELS_N_MASKS].reshape(B, S, NUM_LABELS_N_MASKS)
    logits_nsw = nsw_pad[:, :2].reshape(B, S, 2)

    # labels=None path: losses stay 0 as in the reference module
    loss_dict = OrderedDict([
        ("loss", 0), ("loss_norm", 0), ("loss_n_masks_pred", 0), ("loss_nsw_detection", 0),
    ])
    pred_dict = OrderedDict([
        ("logits_norm", prediction_scores),
        ("logits_n_masks_pred", logits_n_masks),
        ("logits_nsw_detection", logits_nsw),
    ])
    return loss_dict, pred_dict, sequence_output


# ----------------------------- main -----------------------------

if __name__ == "__main__":
    cfg = dict(
        vocab_size=64,
        hidden_size=32,
        num_layers=2,
        num_heads=4,
        intermediate_size=64,
        max_position_embeddings=40,
        type_vocab_size=1,
        pad_token_id=1,
    )

    key = jax.random.PRNGKey(0)
    pkey, ikey = jax.random.split(key)
    params = init_params(pkey, cfg)

    B, S = 2, 8
    input_ids = jax.random.randint(ikey, (B, S), 2, cfg["vocab_size"], dtype=jnp.int32)
    attention_mask = jnp.ones((B, S), jnp.int32)

    loss_dict, pred_dict, seq_out = visobert_forward(params, cfg, input_ids, attention_mask)
    jax.block_until_ready((pred_dict, seq_out))

    assert pred_dict["logits_norm"].shape == (B, S, cfg["vocab_size"])
    assert pred_dict["logits_n_masks_pred"].shape == (B, S, NUM_LABELS_N_MASKS)
    assert pred_dict["logits_nsw_detection"].shape == (B, S, 2)
    assert seq_out.shape == (B, S, cfg["hidden_size"])

    print("KERNEL_OK")
</pallas_src>

<mosaic_0001>
module attributes {stable_mosaic.version = 11 : i64} {
  func.func @_embed_ln_kernel(%arg0: i32, %arg1: memref<16x32xf32, #tpu.memory_space<vmem>>, %arg2: memref<16x32xf32, #tpu.memory_space<vmem>>, %arg3: memref<16x32xf32, #tpu.memory_space<vmem>>, %arg4: memref<1x32xf32, #tpu.memory_space<vmem>>, %arg5: memref<1x32xf32, #tpu.memory_space<vmem>>, %arg6: memref<16x32xf32, #tpu.memory_space<vmem>>) attributes {dimension_semantics = [#tpu.dimension_semantics<parallel>], iteration_bounds = array<i64: 1>, scalar_prefetch = 0 : i64, scratch_operands = 0 : i64, tpu.core_type = #tpu.core_type<tc>, window_params = [{transform_indices = @transform_0, window_bounds = array<i64: 16, 32>}, {transform_indices = @transform_1, window_bounds = array<i64: 16, 32>}, {transform_indices = @transform_2, window_bounds = array<i64: 16, 32>}, {pipeline_mode = #tpu.pipeline_mode<synchronous>, transform_indices = @transform_3, window_bounds = array<i64: 1, 32>}, {pipeline_mode = #tpu.pipeline_mode<synchronous>, transform_indices = @transform_4, window_bounds = array<i64: 1, 32>}, {transform_indices = @transform_5, window_bounds = array<i64: 16, 32>}]} {
    %c0 = arith.constant 0 : index
    %c0_0 = arith.constant 0 : index
    %0 = vector.load %arg1[%c0, %c0_0] : memref<16x32xf32, #tpu.memory_space<vmem>>, vector<16x32xf32>
    %c0_1 = arith.constant 0 : index
    %c0_2 = arith.constant 0 : index
    %1 = vector.load %arg2[%c0_1, %c0_2] : memref<16x32xf32, #tpu.memory_space<vmem>>, vector<16x32xf32>
    %2 = arith.addf %0, %1 : vector<16x32xf32>
    %c0_3 = arith.constant 0 : index
    %c0_4 = arith.constant 0 : index
    %3 = vector.load %arg3[%c0_3, %c0_4] : memref<16x32xf32, #tpu.memory_space<vmem>>, vector<16x32xf32>
    %4 = arith.addf %2, %3 : vector<16x32xf32>
    %c0_5 = arith.constant 0 : index
    %c0_6 = arith.constant 0 : index
    %5 = vector.load %arg4[%c0_5, %c0_6] : memref<1x32xf32, #tpu.memory_space<vmem>>, vector<1x32xf32>
    %c0_7 = arith.constant 0 : index
    %c0_8 = arith.constant 0 : index
    %6 = vector.load %arg5[%c0_7, %c0_8] : memref<1x32xf32, #tpu.memory_space<vmem>>, vector<1x32xf32>
    %cst = arith.constant dense<0.000000e+00> : vector<16xf32>
    %7 = vector.multi_reduction <add>, %4, %cst [1] : vector<16x32xf32> to vector<16xf32>
    %8 = vector.shape_cast %7 : vector<16xf32> to vector<16x1xf32>
    %cst_9 = arith.constant 3.200000e+01 : f32
    %9 = vector.broadcast %cst_9 : f32 to vector<16x1xf32>
    %10 = arith.divf %8, %9 : vector<16x1xf32>
    %11 = vector.broadcast %10 : vector<16x1xf32> to vector<16x32xf32>
    %12 = arith.subf %4, %11 : vector<16x32xf32>
    %13 = arith.mulf %12, %12 : vector<16x32xf32>
    %cst_10 = arith.constant dense<0.000000e+00> : vector<16xf32>
    %14 = vector.multi_reduction <add>, %13, %cst_10 [1] : vector<16x32xf32> to vector<16xf32>
    %15 = vector.shape_cast %14 : vector<16xf32> to vector<16x1xf32>
    %cst_11 = arith.constant 3.200000e+01 : f32
    %16 = vector.broadcast %cst_11 : f32 to vector<16x1xf32>
    %17 = arith.divf %15, %16 : vector<16x1xf32>
    %18 = vector.broadcast %10 : vector<16x1xf32> to vector<16x32xf32>
    %19 = arith.subf %4, %18 : vector<16x32xf32>
    %cst_12 = arith.constant 9.99999996E-13 : f32
    %20 = vector.broadcast %cst_12 : f32 to vector<16x1xf32>
    %21 = arith.addf %17, %20 : vector<16x1xf32>
    %22 = math.rsqrt %21 : vector<16x1xf32>
    %23 = vector.broadcast %22 : vector<16x1xf32> to vector<16x32xf32>
    %24 = arith.mulf %19, %23 : vector<16x32xf32>
    %25 = vector.broadcast %5 : vector<1x32xf32> to vector<16x32xf32>
    %26 = arith.mulf %24, %25 : vector<16x32xf32>
    %27 = vector.broadcast %6 : vector<1x32xf32> to vector<16x32xf32>
    %28 = arith.addf %26, %27 : vector<16x32xf32>
    %c0_13 = arith.constant 0 : index
    %c0_14 = arith.constant 0 : index
    %29 = vector.load %arg6[%c0_13, %c0_14] : memref<16x32xf32, #tpu.memory_space<vmem>>, vector<16x32xf32>
    tpu.vector_store %arg6[%c0_13, %c0_14], %28 {strides = array<i32>} : memref<16x32xf32, #tpu.memory_space<vmem>>, vector<16x32xf32>,
    return
  }
  func.func @transform_0(%arg0: i32) -> (i32, i32) {
    %c0_i32 = arith.constant 0 : i32
    %c0_i32_0 = arith.constant 0 : i32
    return %arg0, %c0_i32 : i32, i32
  }
  func.func @transform_1(%arg0: i32) -> (i32, i32) {
    %c0_i32 = arith.constant 0 : i32
    %c0_i32_0 = arith.constant 0 : i32
    return %arg0, %c0_i32 : i32, i32
  }
  func.func @transform_2(%arg0: i32) -> (i32, i32) {
    %c0_i32 = arith.constant 0 : i32
    %c0_i32_0 = arith.constant 0 : i32
    return %arg0, %c0_i32 : i32, i32
  }
  func.func @transform_3(%arg0: i32) -> (i32, i32) {
    %c0_i32 = arith.constant 0 : i32
    %c0_i32_0 = arith.constant 0 : i32
    %c0_i32_1 = arith.constant 0 : i32
    return %c0_i32, %c0_i32_0 : i32, i32
  }
  func.func @transform_4(%arg0: i32) -> (i32, i32) {
    %c0_i32 = arith.constant 0 : i32
    %c0_i32_0 = arith.constant 0 : i32
    %c0_i32_1 = arith.constant 0 : i32
    return %c0_i32, %c0_i32_0 : i32, i32
  }
  func.func @transform_5(%arg0: i32) -> (i32, i32) {
    %c0_i32 = arith.constant 0 : i32
    %c0_i32_0 = arith.constant 0 : i32
    return %arg0, %c0_i32 : i32, i32
  }
}

</mosaic_0001>

<bundles_post_ra>
// kernel: tpu_custom_call.1
= control target key start
LH: loop header
LB: loop body
LE: loop exit
PB: predicated region body
PF: predicated region fallthrough
CT: control target
= control target key end

     0   :  { %10 = vsyncpa [#allocation3], 0  ;;  %s308_s0 = inlined_call_operand.hbm [shape: f32[16,32], index: 0, kind: input, shape index: {}]   ;;  %s309_s1 = inlined_call_operand.hbm [shape: f32[16,32], index: 1, kind: input, shape index: {}]   ;;  %s310_s2 = inlined_call_operand.hbm [shape: f32[16,32], index: 2, kind: input, shape index: {}]   ;;  %s311_s3 = inlined_call_operand.vmem [shape: f32[1,32], index: 3, kind: input, shape index: {}]   ;;  %s312_s4 = inlined_call_operand.vmem [shape: f32[1,32], index: 4, kind: input, shape index: {}]   ;;  %s313_s5 = inlined_call_operand.hbm [shape: f32[16,32], index: 5, kind: output, shape index: {}]  }
   0x1   :  { %11 = vsyncpa [#allocation6], 0 }
   0x2   :  { %12 = vsyncpa [#allocation4], 0  ;;  %s236_s18 = smov [#allocation5]   ;;  %s237_s20 = smov [#allocation2]  }
   0x3   :  { %s30_s19 = sshll.u32 %s236_s18, 4  ;;  %s18_s21 = sshll.u32 %s237_s20, 4  ;;  %s31_s19 = int_to_ptr.vmem [resolvable:$true] %s30_s19  ;;  %s19_s21 = int_to_ptr.vmem [resolvable:$true] %s18_s21 }
   0x4   :  { %s158_s22 = scalar_lea.vmem %s31_s19, 256  ;;  %p163_p1 = scmp.lt.s32.totalorder %s31_s19, %s31_s19 }
   0x5   :  { %p159_p0 = scmp.ne.s32.totalorder %s31_s19, %s158_s22  ;;  %p164_p2 = scmp.lt.s32.totalorder %s158_s22, %s158_s22 }
   0x7   :  { %p165_p3 = por %p164_p2, %p163_p1 }
   0x9   :  { %p166_p4 = pnand %p165_p3, %p159_p0 }
   0xb   :  { %169 = shalt.err (!%p166_p4)
}
   0xc   :  { %s238_s23 = smov 128   ;;  %s239_s24 = smov 8  }
   0xd   :  { %36 = dma.hbm_to_vmem [thread:$0]  %s309_s1, 256, %s31_s19, [#allocation6], %s238_s23, %s238_s23, %s239_s24  }
   0xe   :  { %s178_s27 = scalar_lea.vmem %s19_s21, 256  ;;  %p183_p6 = scmp.lt.s32.totalorder %s19_s21, %s19_s21 }
   0xf   :  { %p179_p5 = scmp.ne.s32.totalorder %s19_s21, %s178_s27  ;;  %p184_p7 = scmp.lt.s32.totalorder %s178_s27, %s178_s27 }
  0x11   :  { %p185_p8 = por %p184_p7, %p183_p6 }
  0x13   :  { %p186_p9 = pnand %p185_p8, %p179_p5 }
  0x15   :  { %189 = shalt.err (!%p186_p9)
}
  0x16   :  { %24 = dma.hbm_to_vmem [thread:$0]  %s308_s0, 256, %s19_s21, [#allocation3], %s238_s23, %s238_s23, %s239_s24  }
  0x17   :  { %s240_s30 = smov [#allocation7]  }
  0x18   :  { %s42_s6 = sshll.u32 %s240_s30, 4  ;;  %s43_s6 = int_to_ptr.vmem [resolvable:$true] %s42_s6 }
  0x19   :  { %s198_s7 = scalar_lea.vmem %s43_s6, 256  ;;  %p203_p11 = scmp.lt.s32.totalorder %s43_s6, %s43_s6 }
  0x1a   :  { %p199_p10 = scmp.ne.s32.totalorder %s43_s6, %s198_s7  ;;  %p204_p12 = scmp.lt.s32.totalorder %s198_s7, %s198_s7 }
  0x1c   :  { %p205_p13 = por %p204_p12, %p203_p11 }
  0x1e   :  { %p206_p0 = pnand %p205_p13, %p199_p10 }
  0x20   :  { %209 = shalt.err (!%p206_p0)
}
  0x21   :  { %48 = dma.hbm_to_vmem [thread:$0]  %s310_s2, 256, %s43_s6, [#allocation6], %s238_s23, %s238_s23, %s239_s24  }
  0x22   :  { %230 = dma.done.wait [#allocation3], 256  }
  0x23   :  { %231 = vsyncadd [#allocation3], 4294967040 }
  0x24   :  { %232 = dma.done.wait [#allocation6], 512  }
  0x25   :  { %233 = vsyncadd [#allocation6], 4294966784  ;;  %v62_v0 = vld [vmem:[#allocation2] sm:$0xff]  ;;  %v64_v1 = vld [vmem:[#allocation5] sm:$0xff]  ;;  %vm74_vm0 = vcmask 261120   ;;  %s241_s11 = smov [#allocation8]  }
  0x26   :  { %v68_v2 = vld [vmem:[#allocation7] sm:$0xff]  ;;  %v66_v3 = vadd.f32 %v64_v1, %v62_v0  ;;  %v63_v4 = vld [vmem:[#allocation2 + $0x8] sm:$0xff]  ;;  %v65_v5 = vld [vmem:[#allocation5 + $0x8] sm:$0xff]  ;;  %s125_s12 = sshll.u32 %s241_s11, 4  ;;  %s126_s12 = int_to_ptr.vmem [resolvable:$true] %s125_s12 }
  0x27   :  { %v69_v6 = vld [vmem:[#allocation7 + $0x8] sm:$0xff]  ;;  %v67_v7 = vadd.f32 %v65_v5, %v63_v4  ;;  %v138_v29 = vld [vmem:[%s311_s3] ss:$0 sm:$0xff]  ;;  %s210_s13 = scalar_lea.vmem %s126_s12, 256  ;;  %p215_p2 = scmp.lt.s32.totalorder %s126_s12, %s126_s12 }
  0x28   :  { %v70_v8 = vadd.f32 %v68_v2, %v66_v3  ;;  %v139_v31 = vld [vmem:[%s312_s4] ss:$0 sm:$0xff]  ;;  %p211_p1 = scmp.ne.s32.totalorder %s126_s12, %s210_s13  ;;  %p216_p3 = scmp.lt.s32.totalorder %s210_s13, %s210_s13 }
  0x29   :  { %v71_v9 = vadd.f32 %v69_v6, %v67_v7 }
  0x2a   :  { %v75_v10 = vsel %vm74_vm0, %v70_v8, 0.0  ;;  %p217_p4 = por %p216_p3, %p215_p2 }
  0x2b   :  { %76 = vadd.xlane.f32.xlu0 %v75_v10  ;;  %v78_v11 = vsel %vm74_vm0, %v71_v9, 0.0 }
  0x2c   :  { %p218_p5 = pnand %p217_p4, %p211_p1 }
  0x2f   :  { %79 = vadd.xlane.f32.xlu0 %v78_v11 }
  0xb4   :  { %v77_v12 = vpop.xlane.xlu0 %76 }
  0xb5   :  { %v82_v13 = vmul.f32 0.03125, %v77_v12 }
  0xb7   :  { %v84_v14 = vsub.f32 %v70_v8, %v82_v13 }
  0xb8   :  { %v80_v15 = vpop.xlane.xlu0 %79 }
  0xb9   :  { %v83_v16 = vmul.f32 0.03125, %v80_v15  ;;  %v86_v17 = vmul.f32 %v84_v14, %v84_v14 }
  0xbb   :  { %v85_v18 = vsub.f32 %v71_v9, %v83_v16  ;;  %v88_v19 = vsel %vm74_vm0, %v86_v17, 0.0 }
  0xbc   :  { %89 = vadd.xlane.f32.xlu1 %v88_v19 }
  0xbd   :  { %v87_v20 = vmul.f32 %v85_v18, %v85_v18 }
  0xbf   :  { %v91_v21 = vsel %vm74_vm0, %v87_v20, 0.0 }
  0xc0   :  { %92 = vadd.xlane.f32.xlu1 %v91_v21 }
 0x145   :  { %v90_v22 = vpop.xlane.xlu1 %89 }
 0x146   :  { %v94_v23 = vmul.f32 0.03125, %v90_v22 }
 0x148   :  { %v96_v24 = vadd.f32 1e-12, %v94_v23 }
 0x149   :  { %v93_v25 = vpop.xlane.xlu1 %92 }
 0x14a   :  { %146 = vrsqrt.f32 %v96_v24  ;;  %v95_v26 = vmul.f32 0.03125, %v93_v25 }
 0x14c   :  { %v97_v27 = vadd.f32 1e-12, %v95_v26 }
 0x14e   :  { %148 = vrsqrt.f32 %v97_v27 }
 0x157   :  { %v147_v28 = vpop.eup %146 }
 0x158   :  { %v100_v30 = vmul.f32 %v147_v28, %v84_v14 }
 0x15a   :  { %v108_v32 = vmul.f32 %v138_v29, %v100_v30 }
 0x15b   :  { %v149_v33 = vpop.eup %148 }
 0x15c   :  { %v101_v34 = vmul.f32 %v149_v33, %v85_v18  ;;  %v116_v35 = vadd.f32 %v139_v31, %v108_v32 }
 0x15e   :  { %v109_v36 = vmul.f32 %v138_v29, %v101_v34  ;;  %118 = vst.msk [vmem:[#allocation8] sm:$0xff] %vm74_vm0, %v116_v35 }
 0x160   :  { %v117_v37 = vadd.f32 %v139_v31, %v109_v36 }
 0x162   :  { %119 = vst.msk [vmem:[#allocation8 + $0x8] sm:$0xff] %vm74_vm0, %v117_v37 }
 0x163   :  { %221 = shalt.err (!%p218_p5)
}
 0x164   :  { %131 = dma.vmem_to_hbm [thread:$0]  %s126_s12, 256, %s313_s5, [#allocation4], %s238_s23, %s238_s23, %s239_s24  }
 0x165   :  { %234 = dma.done.wait [#allocation4], 256  }
 0x166   :  { %235 = vsyncadd [#allocation4], 4294967040 }
 0x167   :  { %135 = vsyncpa [#allocation3], 1 }
 0x168   :  { %136 = vsyncpa [#allocation6], 1 }
 0x169   :  { %137 = vsyncpa [#allocation4], 1 }

</bundles_post_ra>
